<compile_context>
chip_gen: v7x
topology: tpu7x:2x2x1
jax: 0.10.0
libtpu: 0.0.40
codegen_flags: <defaults>
</compile_context>

<pallas_src>
import jax
import jax.numpy as jnp
from jax.experimental import pallas as pl
from jax.experimental.pallas import tpu as pltpu


def linear_kernel(params_ref, x_ref, o_ref):
    # params_ref: SMEM (4,) f32 = [w0, w1, w2, b]   (scalar prefetch)
    # x_ref:      VMEM (3, TILE_N) f32              (features on sublanes)
    # o_ref:      VMEM (1, TILE_N) f32              (lane-dense output slab)
    w0 = params_ref[0]
    w1 = params_ref[1]
    w2 = params_ref[2]
    bias = params_ref[3]

    x = x_ref[...]                       # (3, TILE_N)
    # Pure VPU broadcast multiply-add; no MXU, no cross-lane ops.
    o_ref[...] = w0 * x[0:1, :] + w1 * x[1:2, :] + w2 * x[2:3, :] + bias


def multivariate_linear_regression(x, w, b, *, tile_n=2048):
    """x: (N, 3) f32, w: (1, 3) f32, b: (1,) f32 -> (N, 1) f32."""
    n, in_f = x.shape
    out_f = w.shape[0]
    assert in_f == 3 and out_f == 1

    # Lane-dense layout: batch on lanes. Pad N up to a multiple of the tile.
    n_128 = ((n + 127) // 128) * 128
    tile_n = min(tile_n, n_128)                        # tile_n stays a multiple of 128
    n_pad = ((n + tile_n - 1) // tile_n) * tile_n
    grid_n = n_pad // tile_n

    x_t = jnp.zeros((in_f, n_pad), dtype=jnp.float32).at[:, :n].set(x.T)

    # Pack the 4 parameters for SMEM scalar prefetch.
    params = jnp.concatenate(
        [w.reshape(-1), b.reshape(-1)]).astype(jnp.float32)  # (4,)

    y_t = pl.pallas_call(
        linear_kernel,
        out_shape=jax.ShapeDtypeStruct((out_f, n_pad), jnp.float32),
        grid_spec=pltpu.PrefetchScalarGridSpec(
            num_scalar_prefetch=1,                     # params -> SMEM
            grid=(grid_n,),
            in_specs=[
                # Full feature axis (3) on sublanes, tile_n lanes per step.
                pl.BlockSpec((in_f, tile_n), lambda i, p: (0, i)),
            ],
            out_specs=pl.BlockSpec((out_f, tile_n), lambda i, p: (0, i)),
        ),
        compiler_params=pltpu.CompilerParams(
            dimension_semantics=("parallel",),         # megacore on v7x
        ),
        cost_estimate=pl.CostEstimate(
            flops=6 * n_pad,
            transcendentals=0,
            bytes_accessed=16 * n_pad,                 # 12 B in + 4 B out per sample
        ),
    )(params, x_t)

    # Strip padding and return in PyTorch's (N, 1) layout.
    return y_t[:, :n].T


if __name__ == "__main__":
    key = jax.random.PRNGKey(0)
    kx, kw, kb = jax.random.split(key, 3)

    # Small batch of multivariate inputs: (N=8, features=3)
    x = jax.random.normal(kx, (8, 3), dtype=jnp.float32)

    # Deterministic parameter init (matches nn.Linear(3, 1) shapes):
    # weight: (out_features=1, in_features=3), bias: (1,)
    bound = 1.0 / jnp.sqrt(3.0)
    w = jax.random.uniform(kw, (1, 3), minval=-bound, maxval=bound,
                           dtype=jnp.float32)
    b = jax.random.uniform(kb, (1,), minval=-bound, maxval=bound,
                           dtype=jnp.float32)

    y = multivariate_linear_regression(x, w, b)
    y = jax.block_until_ready(y)

    # Reference check against plain JAX
    y_ref = x @ w.T + b
    assert y.shape == (8, 1)
    assert jnp.allclose(y, y_ref, atol=1e-5), (y, y_ref)

    print("KERNEL_OK")
</pallas_src>

<mosaic_0001>
module attributes {stable_mosaic.version = 11 : i64} {
  func.func @linear_kernel(%arg0: i32, %arg1: memref<4xf32, #tpu.memory_space<smem>>, %arg2: memref<3x128xf32, #tpu.memory_space<vmem>>, %arg3: memref<1x128xf32, #tpu.memory_space<vmem>>) attributes {dimension_semantics = [#tpu.dimension_semantics<parallel>], iteration_bounds = array<i64: 1>, scalar_prefetch = 1 : i64, scratch_operands = 0 : i64, tpu.core_type = #tpu.core_type<tc>, window_params = [{transform_indices = @transform_0, window_bounds = array<i64: 3, 128>}, {transform_indices = @transform_1, window_bounds = array<i64: 1, 128>}]} {
    %c0 = arith.constant 0 : index
    %0 = memref.load %arg1[%c0] : memref<4xf32, #tpu.memory_space<smem>>
    %c1 = arith.constant 1 : index
    %1 = memref.load %arg1[%c1] : memref<4xf32, #tpu.memory_space<smem>>
    %c2 = arith.constant 2 : index
    %2 = memref.load %arg1[%c2] : memref<4xf32, #tpu.memory_space<smem>>
    %c3 = arith.constant 3 : index
    %3 = memref.load %arg1[%c3] : memref<4xf32, #tpu.memory_space<smem>>
    %c0_0 = arith.constant 0 : index
    %c0_1 = arith.constant 0 : index
    %4 = vector.load %arg2[%c0_0, %c0_1] : memref<3x128xf32, #tpu.memory_space<vmem>>, vector<3x128xf32>
    %5 = vector.extract_strided_slice %4 {offsets = [0, 0], sizes = [1, 128], strides = [1, 1]} : vector<3x128xf32> to vector<1x128xf32>
    %6 = vector.broadcast %0 : f32 to vector<1x128xf32>
    %7 = arith.mulf %6, %5 : vector<1x128xf32>
    %8 = vector.extract_strided_slice %4 {offsets = [1, 0], sizes = [1, 128], strides = [1, 1]} : vector<3x128xf32> to vector<1x128xf32>
    %9 = vector.broadcast %1 : f32 to vector<1x128xf32>
    %10 = arith.mulf %9, %8 : vector<1x128xf32>
    %11 = arith.addf %7, %10 : vector<1x128xf32>
    %12 = vector.extract_strided_slice %4 {offsets = [2, 0], sizes = [1, 128], strides = [1, 1]} : vector<3x128xf32> to vector<1x128xf32>
    %13 = vector.broadcast %2 : f32 to vector<1x128xf32>
    %14 = arith.mulf %13, %12 : vector<1x128xf32>
    %15 = arith.addf %11, %14 : vector<1x128xf32>
    %16 = vector.broadcast %3 : f32 to vector<1x128xf32>
    %17 = arith.addf %15, %16 : vector<1x128xf32>
    %c0_2 = arith.constant 0 : index
    %c0_3 = arith.constant 0 : index
    %18 = vector.load %arg3[%c0_2, %c0_3] : memref<1x128xf32, #tpu.memory_space<vmem>>, vector<1x128xf32>
    tpu.vector_store %arg3[%c0_2, %c0_3], %17 {strides = array<i32>} : memref<1x128xf32, #tpu.memory_space<vmem>>, vector<1x128xf32>,
    return
  }
  func.func @transform_0(%arg0: i32, %arg1: memref<4xf32, #tpu.memory_space<smem>>) -> (i32, i32) {
    %c0_i32 = arith.constant 0 : i32
    %c0_i32_0 = arith.constant 0 : i32
    return %c0_i32, %arg0 : i32, i32
  }
  func.func @transform_1(%arg0: i32, %arg1: memref<4xf32, #tpu.memory_space<smem>>) -> (i32, i32) {
    %c0_i32 = arith.constant 0 : i32
    %c0_i32_0 = arith.constant 0 : i32
    return %c0_i32, %arg0 : i32, i32
  }
}

</mosaic_0001>

<bundles_post_ra>
// kernel: tpu_custom_call.1
= control target key start
LH: loop header
LB: loop body
LE: loop exit
PB: predicated region body
PF: predicated region fallthrough
CT: control target
= control target key end

     0   :  { %s183_s0 = inlined_call_operand.hbm [shape: f32[4], index: 0, kind: input, shape index: {}]   ;;  %s184_s1 = inlined_call_operand.hbm [shape: f32[3,128], index: 1, kind: input, shape index: {}]   ;;  %s185_s2 = inlined_call_operand.hbm [shape: f32[1,128], index: 2, kind: output, shape index: {}]  }
   0x1   :  { %s69_s11 = scalar_lea.hbm %s183_s0, 16 }
   0x2   :  { %p70_p0 = scmp.ne.s32.totalorder %s183_s0, %s69_s11  ;;  %p73_p1 = scmp.lt.u32.totalorder %s69_s11, %s183_s0 }
   0x4   :  { %p75_p2 = pnand %p73_p1, %p70_p0 }
   0x6   :  { %78 = shalt.err (!%p75_p2)  }
   0x7   :  { %s129_s16 = smov [#allocation3]  }
   0x8   :  { %8 = dma.hbm_to_smem %s183_s0, 16, %s129_s16, [#allocation2] }
   0x9   :  { %123 = dma.done.wait [#allocation2], 16 }
   0xa   :  { %124 = vsyncadd [#allocation2], 4294967280 }
   0xb   :  { %10 = sfence }
   0xc   :  { %11 = vsyncpa [#allocation5], 0 }
   0xd   :  { %12 = vsyncpa [#allocation6], 0  ;;  %s130_s19 = smov [#allocation4]   ;;  %s79_s23 = scalar_lea.hbm %s184_s1, 64 }
   0xe   :  { %s19_s20 = sshll.u32 %s130_s19, 4  ;;  %p80_p3 = scmp.ne.s32.totalorder %s184_s1, %s79_s23  ;;  %s20_s20 = int_to_ptr.vmem [resolvable:$true] %s19_s20 }
   0xf   :  { %p83_p4 = scmp.lt.u32.totalorder %s79_s23, %s184_s1 }
  0x11   :  { %p85_p5 = pnand %p83_p4, %p80_p3 }
  0x13   :  { %88 = shalt.err (!%p85_p5)
}
  0x14   :  { %s89_s0 = scalar_lea.vmem %s20_s20, 64  ;;  %p94_p7 = scmp.lt.s32.totalorder %s20_s20, %s20_s20 }
  0x15   :  { %p90_p6 = scmp.ne.s32.totalorder %s20_s20, %s89_s0  ;;  %p95_p8 = scmp.lt.s32.totalorder %s89_s0, %s89_s0 }
  0x17   :  { %p96_p9 = por %p95_p8, %p94_p7 }
  0x19   :  { %p97_p10 = pnand %p96_p9, %p90_p6 }
  0x1b   :  { %100 = shalt.err (!%p97_p10)
}
  0x1c   :  { %22 = dma.hbm_to_vmem [thread:$0]  %s184_s1, 64, %s20_s20, [#allocation5]  }
  0x1d   :  { %125 = dma.done.wait [#allocation5], 64  }
  0x1e   :  { %126 = vsyncadd [#allocation5], 4294967232  ;;  %s26_s30 = sld [smem:[#allocation3]]  ;;  %s63_s3 = sld [smem:[#allocation3 + $0x1]]  ;;  %v30_v0 = vld [vmem:[#allocation4] sm:$0x7] }
  0x1f   :  { %s64_s4 = sld [smem:[#allocation3 + $0x2]]  ;;  %s65_s5 = sld [smem:[#allocation3 + $0x3]] }
  0x20   :  { %s131_s6 = smov [#allocation7]  }
  0x21   :  { %s54_s7 = sshll.u32 %s131_s6, 4  ;;  %s55_s7 = int_to_ptr.vmem [resolvable:$true] %s54_s7 }
  0x22   :  { %s101_s1 = scalar_lea.vmem %s55_s7, 16  ;;  %s105_s8 = scalar_lea.vmem %s55_s7, 32 }
  0x23   :  { %p102_p11 = scmp.ne.s32.totalorder %s55_s7, %s101_s1  ;;  %p106_p12 = scmp.lt.s32.totalorder %s55_s7, %s55_s7 }
  0x24   :  { %v31_v1 = vstv %s26_s30  ;;  %v33_v2 = vstv %s63_s3  ;;  %p107_p13 = scmp.lt.s32.totalorder %s105_s8, %s101_s1 }
  0x25   :  { %v32_v3 = vmul.f32 %v31_v1, %v30_v0  ;;  %v34_v4 = vmul.f32 %v33_v2, %v30_v0  ;;  %v39_v5 = vstv %s64_s4  ;;  %v45_v10 = vstv %s65_s5 }
  0x26   :  { %v40_v6 = vmul.f32 %v39_v5, %v30_v0  ;;  %p108_p0 = por %p107_p13, %p106_p12 }
  0x27   :  { %v36_v7 = vrot.slane %v34_v4, 1 }
  0x28   :  { %v42_v8 = vrot.slane %v40_v6, 2  ;;  %p109_p1 = pnand %p108_p0, %p102_p11 }
  0x29   :  { %v38_v9 = vadd.f32 %v36_v7, %v32_v3 }
  0x2b   :  { %v44_v11 = vadd.f32 %v42_v8, %v38_v9 }
  0x2d   :  { %v46_v12 = vadd.f32 %v45_v10, %v44_v11 }
  0x2f   :  { %47 = vst [vmem:[#allocation7] sm:$0x1] %v46_v12 }
  0x30   :  { %112 = shalt.err (!%p109_p1)
}
  0x31   :  { %s113_s11 = scalar_lea.hbm %s185_s2, 16 }
  0x32   :  { %p114_p2 = scmp.ne.s32.totalorder %s185_s2, %s113_s11  ;;  %p117_p3 = scmp.lt.u32.totalorder %s113_s11, %s185_s2 }
  0x34   :  { %p119_p4 = pnand %p117_p3, %p114_p2 }
  0x36   :  { %122 = shalt.err (!%p119_p4)
}
  0x37   :  { %57 = dma.vmem_to_hbm [thread:$0]  %s55_s7, 16, %s185_s2, [#allocation6]  }
  0x38   :  { %127 = dma.done.wait [#allocation6], 16  }
  0x39   :  { %128 = vsyncadd [#allocation6], 4294967280 }
  0x3a   :  { %61 = vsyncpa [#allocation5], 1 }
  0x3b   :  { %62 = vsyncpa [#allocation6], 1 }

</bundles_post_ra>
